<compile_context>
chip_gen: v7x
topology: tpu7x:2x2x1
jax: 0.10.0
libtpu: 0.0.40
codegen_flags: <defaults>
</compile_context>

<pallas_src>
import numpy as np
import jax
import jax.numpy as jnp
from jax.experimental import pallas as pl
from jax.experimental.pallas import tpu as pltpu

# Small synthetic backbone config.
PATCH = 4              # patch (conv kernel/stride) size
EMBED = 128            # patch-embed dim (lane-dense intermediates)
FEAT = 32              # output feature dim (what timm num_classes=0 returns)
LANE = 128             # TPU lane width (output padded to a multiple of this)
BATCH_BLOCK_MAX = 64   # max images per grid step (64 imgs * 16 patches = 1024 rows)


def _round_up(x, m):
    return ((x + m - 1) // m) * m


def _choose_batch_block(batch):
    """Images per grid step: big enough to amortize grid overhead, but aim for
    >=2 grid chunks when possible so v7x can use both TensorCores."""
    if batch <= 8:
        return 8
    target = -(-batch // 2)                        # ~half the batch per chunk
    return min(BATCH_BLOCK_MAX, _round_up(target, 8))


def _backbone_kernel(x_ref, w1_ref, b1_ref, w2_ref, b2_ref, o_ref):
    # x_ref  : (Bb*P, D)   bf16  patchified pixels for Bb images (image-major)
    # w1_ref : (D, E)      bf16  patch-embed weights
    # b1_ref : (1, E)      f32
    # w2_ref : (E, Fpad)   bf16  feature projection (zero-padded to lanes)
    # b2_ref : (1, Fpad)   f32
    # o_ref  : (Bb, Fpad)  f32
    Bb = o_ref.shape[0]
    P = x_ref.shape[0] // Bb
    E = w1_ref.shape[1]

    # Patch embed: one large MXU matmul, bf16 operands, f32 accumulation.
    h = jnp.dot(x_ref[...], w1_ref[...],
                preferred_element_type=jnp.float32)              # (Bb*P, E)
    h = h + b1_ref[...]
    h = jax.nn.gelu(h, approximate=True)                         # f32 on EUP

    # Global average pool over patches: sublane reduce on XLU/VPU (MXU idle
    # slots), replacing the previous O(Bb^2) block-diagonal pool matmul.
    pooled = jnp.sum(h.reshape(Bb, P, E), axis=1) * (1.0 / P)    # (Bb, E) f32

    # Feature projection back on the MXU (bf16 operands, f32 accumulation).
    feat = jnp.dot(pooled.astype(w2_ref.dtype), w2_ref[...],
                   preferred_element_type=jnp.float32)           # (Bb, Fpad)
    o_ref[...] = (feat + b2_ref[...]).astype(o_ref.dtype)


def _patchify(x_nchw):
    """NCHW -> (B, num_patches, patch*patch*C), done in bf16."""
    B, C, H, W = x_nchw.shape
    x = x_nchw.astype(jnp.bfloat16)                              # bf16 early
    x = jnp.transpose(x, (0, 2, 3, 1))                           # NHWC
    x = x.reshape(B, H // PATCH, PATCH, W // PATCH, PATCH, C)
    x = jnp.transpose(x, (0, 1, 3, 2, 4, 5))
    x = x.reshape(B, (H // PATCH) * (W // PATCH), PATCH * PATCH * C)
    return x


def backbone_forward(x_nchw, w1, b1, w2p, b2p):
    """Synthetic timm backbone (num_classes=0): returns (B, FEAT) features."""
    xp = _patchify(x_nchw)                                       # (B, P, D) bf16
    B, P, D = xp.shape
    E = w1.shape[1]
    Fpad = w2p.shape[1]

    Bb = _choose_batch_block(B)
    num_chunks = -(-B // Bb)
    B_pad = num_chunks * Bb

    # Pad batch to a whole number of chunks; flatten to a 2-D lane-friendly slab.
    xp = jnp.pad(xp, ((0, B_pad - B), (0, 0), (0, 0)))
    x2d = xp.reshape(B_pad * P, D)                               # (B_pad*P, D) bf16

    out = pl.pallas_call(
        _backbone_kernel,
        out_shape=jax.ShapeDtypeStruct((B_pad, Fpad), jnp.float32),
        grid_spec=pl.GridSpec(
            grid=(num_chunks,),
            in_specs=[
                pl.BlockSpec((Bb * P, D), lambda c: (c, 0)),     # per-chunk pixels
                pl.BlockSpec((D, E), lambda c: (0, 0)),          # resident weights
                pl.BlockSpec((1, E), lambda c: (0, 0)),
                pl.BlockSpec((E, Fpad), lambda c: (0, 0)),
                pl.BlockSpec((1, Fpad), lambda c: (0, 0)),
            ],
            out_specs=pl.BlockSpec((Bb, Fpad), lambda c: (c, 0)),
        ),
        compiler_params=pltpu.CompilerParams(
            dimension_semantics=("parallel",)),                  # v7x: 2 TCs
    )(x2d, w1, b1, w2p, b2p)

    return out[:B, :FEAT]


# Jitted forward: fuses patchify transposes / bf16 cast / pad with the call.
_backbone_forward_jit = jax.jit(backbone_forward)


class TimmModelPallas:
    """JAX/Pallas equivalent of clipreid TimmModel."""

    def __init__(self, in_chans, key=None):
        if key is None:
            key = jax.random.PRNGKey(0)
        k1, k2 = jax.random.split(key)
        patch_dim = PATCH * PATCH * in_chans
        w1 = (jax.random.normal(k1, (patch_dim, EMBED), jnp.float32)
              * (1.0 / np.sqrt(patch_dim)))
        b1 = jnp.zeros((1, EMBED), jnp.float32)
        w2 = (jax.random.normal(k2, (EMBED, FEAT), jnp.float32)
              * (1.0 / np.sqrt(EMBED)))
        b2 = jnp.zeros((1, FEAT), jnp.float32)
        self.params = {"w1": w1, "b1": b1, "w2": w2, "b2": b2}

        # Hoisted constant prep: bf16 weight casts + lane-padding to 128,
        # cached so every forward call reuses the same device arrays.
        Fpad = _round_up(FEAT, LANE)
        self._w1 = w1.astype(jnp.bfloat16)
        self._b1 = b1.astype(jnp.float32)
        self._w2p = jnp.pad(w2, ((0, 0), (0, Fpad - FEAT))).astype(jnp.bfloat16)
        self._b2p = jnp.pad(b2, ((0, 0), (0, Fpad - FEAT))).astype(jnp.float32)

        # Created as in __init__, unused in forward (same as PyTorch module).
        self.logit_scale = jnp.array(np.log(1.0 / 0.07), jnp.float32)

    def __call__(self, img1, img2=None):
        if img2 is not None:
            images = jnp.concatenate([img1, img2], axis=0)
            feats = _backbone_forward_jit(images, self._w1, self._b1,
                                          self._w2p, self._b2p)
            n1 = img1.shape[0]
            return feats[:n1, :], feats[n1:, :]
        return _backbone_forward_jit(img1, self._w1, self._b1,
                                     self._w2p, self._b2p)


if __name__ == "__main__":
    key = jax.random.PRNGKey(0)
    k_img1, k_img2, k_model = jax.random.split(key, 3)

    B, C, H, W = 2, 4, 16, 16                      # small NCHW images
    img1 = jax.random.normal(k_img1, (B, C, H, W), jnp.float32)
    img2 = jax.random.normal(k_img2, (B, C, H, W), jnp.float32)

    model = TimmModelPallas(in_chans=C, key=k_model)

    # Two-image path (concat -> backbone -> split).
    f1, f2 = model(img1, img2)
    f1 = jax.block_until_ready(f1)
    f2 = jax.block_until_ready(f2)

    # Single-image path.
    f_single = jax.block_until_ready(model(img1))

    assert f1.shape == (B, FEAT) and f2.shape == (B, FEAT)
    assert f_single.shape == (B, FEAT)
    # Consistency: single-image path must match first half of concat path.
    np.testing.assert_allclose(np.asarray(f1), np.asarray(f_single),
                               rtol=1e-5, atol=1e-5)
    print("KERNEL_OK")
</pallas_src>

<mosaic_0001>
module attributes {stable_mosaic.version = 11 : i64} {
  func.func @_backbone_kernel(%arg0: i32, %arg1: memref<128x64xbf16, #tpu.memory_space<vmem>>, %arg2: memref<64x128xbf16, #tpu.memory_space<vmem>>, %arg3: memref<1x128xf32, #tpu.memory_space<vmem>>, %arg4: memref<128x128xbf16, #tpu.memory_space<vmem>>, %arg5: memref<1x128xf32, #tpu.memory_space<vmem>>, %arg6: memref<8x128xf32, #tpu.memory_space<vmem>>) attributes {dimension_semantics = [#tpu.dimension_semantics<parallel>], iteration_bounds = array<i64: 1>, scalar_prefetch = 0 : i64, scratch_operands = 0 : i64, tpu.core_type = #tpu.core_type<tc>, window_params = [{transform_indices = @transform_0, window_bounds = array<i64: 128, 64>}, {pipeline_mode = #tpu.pipeline_mode<synchronous>, transform_indices = @transform_1, window_bounds = array<i64: 64, 128>}, {pipeline_mode = #tpu.pipeline_mode<synchronous>, transform_indices = @transform_2, window_bounds = array<i64: 1, 128>}, {pipeline_mode = #tpu.pipeline_mode<synchronous>, transform_indices = @transform_3, window_bounds = array<i64: 128, 128>}, {pipeline_mode = #tpu.pipeline_mode<synchronous>, transform_indices = @transform_4, window_bounds = array<i64: 1, 128>}, {transform_indices = @transform_5, window_bounds = array<i64: 8, 128>}]} {
    %c0 = arith.constant 0 : index
    %c0_0 = arith.constant 0 : index
    %0 = vector.load %arg1[%c0, %c0_0] : memref<128x64xbf16, #tpu.memory_space<vmem>>, vector<128x64xbf16>
    %c0_1 = arith.constant 0 : index
    %c0_2 = arith.constant 0 : index
    %1 = vector.load %arg2[%c0_1, %c0_2] : memref<64x128xbf16, #tpu.memory_space<vmem>>, vector<64x128xbf16>
    %cst = arith.constant dense<0.000000e+00> : vector<128x128xf32>
    %2 = tpu.matmul %0, %1, %cst {dimension_numbers = #tpu.dot_dimension_numbers<[1], [0], [0], [1], [0, 0, 1, 1], [], []>} : vector<128x64xbf16>, vector<64x128xbf16>, vector<128x128xf32> -> vector<128x128xf32>
    %c0_3 = arith.constant 0 : index
    %c0_4 = arith.constant 0 : index
    %3 = vector.load %arg3[%c0_3, %c0_4] : memref<1x128xf32, #tpu.memory_space<vmem>>, vector<1x128xf32>
    %4 = vector.broadcast %3 : vector<1x128xf32> to vector<128x128xf32>
    %5 = arith.addf %2, %4 : vector<128x128xf32>
    %6 = arith.mulf %5, %5 : vector<128x128xf32>
    %7 = arith.mulf %5, %6 : vector<128x128xf32>
    %cst_5 = arith.constant 4.471500e-02 : f32
    %8 = vector.broadcast %cst_5 : f32 to vector<128x128xf32>
    %9 = arith.mulf %8, %7 : vector<128x128xf32>
    %10 = arith.addf %5, %9 : vector<128x128xf32>
    %cst_6 = arith.constant 0.797884583 : f32
    %11 = vector.broadcast %cst_6 : f32 to vector<128x128xf32>
    %12 = arith.mulf %11, %10 : vector<128x128xf32>
    %13 = math.tanh %12 : vector<128x128xf32>
    %cst_7 = arith.constant 1.000000e+00 : f32
    %14 = vector.broadcast %cst_7 : f32 to vector<128x128xf32>
    %15 = arith.addf %14, %13 : vector<128x128xf32>
    %cst_8 = arith.constant 5.000000e-01 : f32
    %16 = vector.broadcast %cst_8 : f32 to vector<128x128xf32>
    %17 = arith.mulf %16, %15 : vector<128x128xf32>
    %18 = arith.mulf %5, %17 : vector<128x128xf32>
    %19 = vector.shape_cast %18 : vector<128x128xf32> to vector<8x16x128xf32>
    %cst_9 = arith.constant dense<0.000000e+00> : vector<8x128xf32>
    %20 = vector.multi_reduction <add>, %19, %cst_9 [1] : vector<8x16x128xf32> to vector<8x128xf32>
    %cst_10 = arith.constant 6.250000e-02 : f32
    %21 = vector.broadcast %cst_10 : f32 to vector<8x128xf32>
    %22 = arith.mulf %20, %21 : vector<8x128xf32>
    %23 = arith.truncf %22 : vector<8x128xf32> to vector<8x128xbf16>
    %c0_11 = arith.constant 0 : index
    %c0_12 = arith.constant 0 : index
    %24 = vector.load %arg4[%c0_11, %c0_12] : memref<128x128xbf16, #tpu.memory_space<vmem>>, vector<128x128xbf16>
    %cst_13 = arith.constant dense<0.000000e+00> : vector<8x128xf32>
    %25 = tpu.matmul %23, %24, %cst_13 {dimension_numbers = #tpu.dot_dimension_numbers<[1], [0], [0], [1], [0, 0, 1, 1], [], []>} : vector<8x128xbf16>, vector<128x128xbf16>, vector<8x128xf32> -> vector<8x128xf32>
    %c0_14 = arith.constant 0 : index
    %c0_15 = arith.constant 0 : index
    %26 = vector.load %arg5[%c0_14, %c0_15] : memref<1x128xf32, #tpu.memory_space<vmem>>, vector<1x128xf32>
    %27 = vector.broadcast %26 : vector<1x128xf32> to vector<8x128xf32>
    %28 = arith.addf %25, %27 : vector<8x128xf32>
    %c0_16 = arith.constant 0 : index
    %c0_17 = arith.constant 0 : index
    %29 = vector.load %arg6[%c0_16, %c0_17] : memref<8x128xf32, #tpu.memory_space<vmem>>, vector<8x128xf32>
    tpu.vector_store %arg6[%c0_16, %c0_17], %28 {strides = array<i32>} : memref<8x128xf32, #tpu.memory_space<vmem>>, vector<8x128xf32>,
    return
  }
  func.func @transform_0(%arg0: i32) -> (i32, i32) {
    %c0_i32 = arith.constant 0 : i32
    %c0_i32_0 = arith.constant 0 : i32
    return %arg0, %c0_i32 : i32, i32
  }
  func.func @transform_1(%arg0: i32) -> (i32, i32) {
    %c0_i32 = arith.constant 0 : i32
    %c0_i32_0 = arith.constant 0 : i32
    %c0_i32_1 = arith.constant 0 : i32
    return %c0_i32, %c0_i32_0 : i32, i32
  }
  func.func @transform_2(%arg0: i32) -> (i32, i32) {
    %c0_i32 = arith.constant 0 : i32
    %c0_i32_0 = arith.constant 0 : i32
    %c0_i32_1 = arith.constant 0 : i32
    return %c0_i32, %c0_i32_0 : i32, i32
  }
  func.func @transform_3(%arg0: i32) -> (i32, i32) {
    %c0_i32 = arith.constant 0 : i32
    %c0_i32_0 = arith.constant 0 : i32
    %c0_i32_1 = arith.constant 0 : i32
    return %c0_i32, %c0_i32_0 : i32, i32
  }
  func.func @transform_4(%arg0: i32) -> (i32, i32) {
    %c0_i32 = arith.constant 0 : i32
    %c0_i32_0 = arith.constant 0 : i32
    %c0_i32_1 = arith.constant 0 : i32
    return %c0_i32, %c0_i32_0 : i32, i32
  }
  func.func @transform_5(%arg0: i32) -> (i32, i32) {
    %c0_i32 = arith.constant 0 : i32
    %c0_i32_0 = arith.constant 0 : i32
    return %arg0, %c0_i32 : i32, i32
  }
}

</mosaic_0001>

<bundles_post_ra>
// kernel: backbone_forward.1
= control target key start
LH: loop header
LB: loop body
LE: loop exit
PB: predicated region body
PF: predicated region fallthrough
CT: control target
= control target key end

     0   :  { %vm116_vm0 = vcmask 523264   ;;  %v751_v13 = vmov 0.0   ;;  %vm752_vm1 = vmmov 0   ;;  %vm493_vm2 = vcmask 1041409   ;;  %s991_s1 = inlined_call_operand.vmem [shape: bf16[64,128], index: 1, kind: input, shape index: {}]   ;;  %s992_s0 = inlined_call_operand.vmem [shape: bf16[128,64], index: 0, kind: input, shape index: {}]   ;;  %s993_s3 = inlined_call_operand.vmem [shape: bf16[128,128], index: 3, kind: input, shape index: {}]   ;;  %s994_s2 = inlined_call_operand.vmem [shape: f32[1,128], index: 2, kind: input, shape index: {}]   ;;  %s995_s4 = inlined_call_operand.vmem [shape: f32[1,128], index: 4, kind: input, shape index: {}]   ;;  %s996_s5 = inlined_call_operand.vmem [shape: f32[8,128], index: 5, kind: output, shape index: {}]  }
   0x1   :  { %v699_v0 = vld [vmem:[%s991_s1] sm:$0xff]   ;;  %v700_v1 = vld [vmem:[%s991_s1 + $0x8] sm:$0xff]   ;;  %v701_v2 = vld [vmem:[%s991_s1 + $0x10] sm:$0xff]   ;;  %677 = vmatprep.subr.bf16.mxu1 %v751_v13  ;;  %693 = vmatprep.mubr.msk.bf16.mxu1 %vm752_vm1, %v751_v13  ;;  %vm495_vm3 = vcmask 1042434   ;;  %vm497_vm4 = vcmask 1043459   ;;  %vm499_vm5 = vcmask 1044484  }
   0x2   :  { %653 = vmatprep.subr.bf16.mxu0 %v699_v0  ;;  %v703_v3 = vld [vmem:[%s992_s0] sm:$0xff]   ;;  %v702_v4 = vld [vmem:[%s991_s1 + $0x18] sm:$0xff]   ;;  %v704_v5 = vld [vmem:[%s992_s0 + $0x8] sm:$0xff]   ;;  %vm501_vm6 = vcmask 1045509   ;;  %vm503_vm7 = vcmask 1046534   ;;  %vm505_vm8 = vcmask 1047559  }
   0x3   :  { %654 = vmatpush3.bf16.msra.mxu0 %v699_v0  ;;  %661 = vmatprep.mubr.msk.bf16.mxu0 %vm116_vm0, %v703_v3  ;;  %v705_v6 = vld [vmem:[%s992_s0 + $0x10] sm:$0xff]   ;;  %v706_v7 = vld [vmem:[%s992_s0 + $0x18] sm:$0xff]   ;;  %v707_v8 = vld [vmem:[%s992_s0 + $0x20] sm:$0xff]  }
   0x4   :  { %655 = vmatprep.subr.bf16.mxu0 %v700_v1  ;;  %v708_v9 = vld [vmem:[%s992_s0 + $0x28] sm:$0xff]   ;;  %v709_v10 = vld [vmem:[%s992_s0 + $0x30] sm:$0xff]   ;;  %v710_v11 = vld [vmem:[%s992_s0 + $0x38] sm:$0xff]  }
   0x5   :  { %v711_v12 = vld [vmem:[%s993_s3] sm:$0xff]   ;;  %v712_v14 = vld [vmem:[%s993_s3 + $0x8] sm:$0xff]   ;;  %v713_v15 = vld [vmem:[%s993_s3 + $0x10] sm:$0xff]  }
   0x6   :  { %678 = vmatpush3.bf16.msra.mxu1 %v711_v12  ;;  %v714_v16 = vld [vmem:[%s993_s3 + $0x18] sm:$0xff]   ;;  %v715_v17 = vld [vmem:[%s993_s3 + $0x20] sm:$0xff]   ;;  %v716_v18 = vld [vmem:[%s993_s3 + $0x28] sm:$0xff]  }
   0x7   :  { %656 = vmatpush3.bf16.msra.mxu0 %v700_v1  ;;  %679 = vmatprep.subr.bf16.mxu1 %v751_v13  ;;  %v717_v19 = vld [vmem:[%s993_s3 + $0x30] sm:$0xff]   ;;  %v718_v20 = vld [vmem:[%s993_s3 + $0x38] sm:$0xff]   ;;  %v854_v21 = vld [vmem:[%s994_s2] ss:$0 sm:$0xff] }
   0x8   :  { %657 = vmatprep.subr.bf16.mxu0 %v701_v2 }
   0xa   :  { %680 = vmatpush3.bf16.msra.mxu1 %v712_v14 }
   0xb   :  { %658 = vmatpush3.bf16.msra.mxu0 %v701_v2  ;;  %681 = vmatprep.subr.bf16.mxu1 %v751_v13 }
   0xc   :  { %659 = vmatprep.subr.bf16.mxu0 %v702_v4 }
   0xe   :  { %682 = vmatpush3.bf16.msra.mxu1 %v713_v15 }
   0xf   :  { %660 = vmatpush3.bf16.msra.mxu0 %v702_v4  ;;  %683 = vmatprep.subr.bf16.mxu1 %v751_v13 }
  0x12   :  { %662 = vmatmul.mubr.msk.bf16.vlgmr.msra.gmra.mrb[0].mxu0 %vm116_vm0, %v704_v5  ;;  %684 = vmatpush3.bf16.msra.mxu1 %v714_v16 }
  0x13   :  { %665 = vmatprep.mubr.msk.bf16.mxu0 %vm116_vm0, %v705_v6  ;;  %685 = vmatprep.subr.bf16.mxu1 %v751_v13 }
  0x16   :  { %686 = vmatpush3.bf16.msra.mxu1 %v715_v17 }
  0x17   :  { %687 = vmatprep.subr.bf16.mxu1 %v751_v13 }
  0x1a   :  { %666 = vmatmul.mubr.msk.bf16.gmra.mrb[4].mxu0 %vm116_vm0, %v706_v7  ;;  %688 = vmatpush3.bf16.msra.mxu1 %v716_v18 }
  0x1b   :  { %669 = vmatprep.mubr.msk.bf16.mxu0 %vm116_vm0, %v707_v8  ;;  %689 = vmatprep.subr.bf16.mxu1 %v751_v13 }
  0x1e   :  { %690 = vmatpush3.bf16.msra.mxu1 %v717_v19 }
  0x1f   :  { %691 = vmatprep.subr.bf16.mxu1 %v751_v13 }
  0x22   :  { %670 = vmatmul.mubr.msk.bf16.gmra.mrb[8].mxu0 %vm116_vm0, %v708_v9  ;;  %692 = vmatpush3.bf16.msra.mxu1 %v718_v20 }
  0x23   :  { %673 = vmatprep.mubr.msk.bf16.mxu0 %vm116_vm0, %v709_v10 }
  0x2a   :  { %674 = vmatmul.mubr.msk.bf16.gmra.mrb[12].mxu0 %vm116_vm0, %v710_v11 }
  0xe5   :  { %v663_v22 = vpop.f32.mrb[0].mxu0 }
  0xe6   :  { %v857_v23 = vadd.f32 %v663_v22, %v854_v21  ;;  %v175_v24 = vpop.f32.mrb[1].mxu0 }
  0xe7   :  { %v860_v25 = vadd.f32 %v854_v21, %v175_v24  ;;  %v664_v26 = vpop.f32.mrb[2].mxu0 }
  0xe8   :  { %v240_v27 = vmul.f32 %v857_v23, %v857_v23  ;;  %v865_v28 = vadd.f32 %v664_v26, %v854_v21  ;;  %v178_v29 = vpop.f32.mrb[3].mxu0 }
  0xe9   :  { %v238_v30 = vmul.f32 %v860_v25, %v860_v25  ;;  %v870_v31 = vadd.f32 %v854_v21, %v178_v29 }
  0xea   :  { %v256_v32 = vmul.f32 %v240_v27, %v857_v23  ;;  %v241_v33 = vmul.f32 %v865_v28, %v865_v28 }
  0xeb   :  { %v254_v34 = vmul.f32 %v238_v30, %v860_v25  ;;  %v239_v35 = vmul.f32 %v870_v31, %v870_v31 }
  0xec   :  { %v272_v36 = vmul.f32 0.044715, %v256_v32  ;;  %v257_v37 = vmul.f32 %v241_v33, %v865_v28 }
  0xed   :  { %v270_v38 = vmul.f32 0.044715, %v254_v34  ;;  %v255_v39 = vmul.f32 %v239_v35, %v870_v31  ;;  %v667_v40 = vpop.f32.mrb[4].mxu0 }
  0xee   :  { %v288_v41 = vadd.f32 %v272_v36, %v857_v23  ;;  %v273_v42 = vmul.f32 0.044715, %v257_v37  ;;  %v882_v43 = vadd.f32 %v667_v40, %v854_v21  ;;  %v191_v44 = vpop.f32.mrb[5].mxu0 }
  0xef   :  { %v286_v45 = vadd.f32 %v270_v38, %v860_v25  ;;  %v271_v46 = vmul.f32 0.044715, %v255_v39  ;;  %v886_v47 = vadd.f32 %v854_v21, %v191_v44  ;;  %v668_v48 = vpop.f32.mrb[6].mxu0 }
  0xf0   :  { %v304_v49 = vmul.f32 0.7978846, %v288_v41  ;;  %v289_v50 = vadd.f32 %v273_v42, %v865_v28  ;;  %v244_v51 = vmul.f32 %v882_v43, %v882_v43  ;;  %v892_v52 = vadd.f32 %v668_v48, %v854_v21  ;;  %v194_v53 = vpop.f32.mrb[7].mxu0 }
  0xf1   :  { %v302_v54 = vmul.f32 0.7978846, %v286_v45  ;;  %v287_v55 = vadd.f32 %v271_v46, %v870_v31  ;;  %v242_v56 = vmul.f32 %v886_v47, %v886_v47  ;;  %v898_v57 = vadd.f32 %v854_v21, %v194_v53 }
  0xf2   :  { %719 = vtanh.f32 %v304_v49  ;;  %v305_v58 = vmul.f32 0.7978846, %v289_v50  ;;  %v260_v59 = vmul.f32 %v244_v51, %v882_v43  ;;  %v245_v60 = vmul.f32 %v892_v52, %v892_v52 }
  0xf3   :  { %721 = vtanh.f32 %v302_v54  ;;  %v303_v61 = vmul.f32 0.7978846, %v287_v55  ;;  %v258_v62 = vmul.f32 %v242_v56, %v886_v47  ;;  %v243_v63 = vmul.f32 %v898_v57, %v898_v57 }
  0xf4   :  { %723 = vtanh.f32 %v305_v58  ;;  %v276_v0 = vmul.f32 0.044715, %v260_v59  ;;  %v261_v1 = vmul.f32 %v245_v60, %v892_v52 }
  0xf5   :  { %725 = vtanh.f32 %v303_v61  ;;  %v274_v2 = vmul.f32 0.044715, %v258_v62  ;;  %v259_v3 = vmul.f32 %v243_v63, %v898_v57  ;;  %v671_v4 = vpop.f32.mrb[8].mxu0 }
  0xf6   :  { %v292_v5 = vadd.f32 %v276_v0, %v882_v43  ;;  %v277_v6 = vmul.f32 0.044715, %v261_v1  ;;  %v910_v7 = vadd.f32 %v671_v4, %v854_v21  ;;  %v207_v8 = vpop.f32.mrb[9].mxu0 }
  0xf7   :  { %v290_v9 = vadd.f32 %v274_v2, %v886_v47  ;;  %v275_v10 = vmul.f32 0.044715, %v259_v3  ;;  %v914_v11 = vadd.f32 %v854_v21, %v207_v8  ;;  %v672_v12 = vpop.f32.mrb[10].mxu0 }
  0xf8   :  { %v308_v13 = vmul.f32 0.7978846, %v292_v5  ;;  %v293_v14 = vadd.f32 %v277_v6, %v892_v52  ;;  %v248_v15 = vmul.f32 %v910_v7, %v910_v7  ;;  %v920_v16 = vadd.f32 %v672_v12, %v854_v21  ;;  %v210_v17 = vpop.f32.mrb[11].mxu0 }
  0xf9   :  { %v306_v18 = vmul.f32 0.7978846, %v290_v9  ;;  %v291_v19 = vadd.f32 %v275_v10, %v898_v57  ;;  %v246_v20 = vmul.f32 %v914_v11, %v914_v11  ;;  %v926_v22 = vadd.f32 %v854_v21, %v210_v17 }
  0xfa   :  { %727 = vtanh.f32 %v308_v13  ;;  %v309_v24 = vmul.f32 0.7978846, %v293_v14  ;;  %v264_v26 = vmul.f32 %v248_v15, %v910_v7  ;;  %v249_v27 = vmul.f32 %v920_v16, %v920_v16 }
  0xfb   :  { %729 = vtanh.f32 %v306_v18  ;;  %v307_v29 = vmul.f32 0.7978846, %v291_v19  ;;  %v262_v30 = vmul.f32 %v246_v20, %v914_v11  ;;  %v247_v32 = vmul.f32 %v926_v22, %v926_v22 }
  0xfc   :  { %v720_v33 = vpop.eup %719  ;;  %731 = vtanh.f32 %v309_v24  ;;  %v280_v34 = vmul.f32 0.044715, %v264_v26  ;;  %v265_v35 = vmul.f32 %v249_v27, %v920_v16 }
  0xfd   :  { %v722_v36 = vpop.eup %721  ;;  %v336_v37 = vadd.f32 1.0, %v720_v33  ;;  %733 = vtanh.f32 %v307_v29  ;;  %v278_v38 = vmul.f32 0.044715, %v262_v30  ;;  %v263_v39 = vmul.f32 %v247_v32, %v926_v22  ;;  %v675_v40 = vpop.f32.mrb[12].mxu0 }
  0xfe   :  { %v724_v41 = vpop.eup %723  ;;  %v334_v42 = vadd.f32 1.0, %v722_v36  ;;  %v296_v44 = vadd.f32 %v280_v34, %v910_v7  ;;  %v281_v45 = vmul.f32 0.044715, %v265_v35  ;;  %v938_v46 = vadd.f32 %v675_v40, %v854_v21  ;;  %v223_v48 = vpop.f32.mrb[13].mxu0 }
  0xff   :  { %v726_v49 = vpop.eup %725  ;;  %v352_v50 = vmul.f32 0.5, %v336_v37  ;;  %v337_v51 = vadd.f32 1.0, %v724_v41  ;;  %v294_v53 = vadd.f32 %v278_v38, %v914_v11  ;;  %v279_v54 = vmul.f32 0.044715, %v263_v39  ;;  %v676_v55 = vpop.f32.mrb[14].mxu0 }
 0x100   :  { %v350_v56 = vmul.f32 0.5, %v334_v42  ;;  %v335_v58 = vadd.f32 1.0, %v726_v49  ;;  %v312_v59 = vmul.f32 0.7978846, %v296_v44  ;;  %v297_v60 = vadd.f32 %v281_v45, %v920_v16  ;;  %v226_v61 = vpop.f32.mrb[15].mxu0 }
 0x101   :  { %v368_v62 = vmul.f32 %v352_v50, %v857_v23  ;;  %v353_v63 = vmul.f32 0.5, %v337_v51  ;;  %v310_v0 = vmul.f32 0.7978846, %v294_v53  ;;  %v295_v1 = vadd.f32 %v279_v54, %v926_v22 }
 0x102   :  { %v366_v2 = vmul.f32 %v350_v56, %v860_v25  ;;  %v351_v3 = vmul.f32 0.5, %v335_v58  ;;  %735 = vtanh.f32 %v312_v59  ;;  %v313_v4 = vmul.f32 0.7978846, %v297_v60 }
 0x103   :  { %v369_v5 = vmul.f32 %v353_v63, %v865_v28  ;;  %737 = vtanh.f32 %v310_v0  ;;  %v311_v6 = vmul.f32 0.7978846, %v295_v1  ;;  %v252_v8 = vmul.f32 %v938_v46, %v938_v46 }
 0x104   :  { %v728_v9 = vpop.eup %727  ;;  %v367_v10 = vmul.f32 %v351_v3, %v870_v31  ;;  %739 = vtanh.f32 %v313_v4  ;;  %v950_v23 = vadd.f32 %v854_v21, %v223_v48  ;;  %v953_v12 = vadd.f32 %v676_v55, %v854_v21 }
 0x105   :  { %v730_v25 = vpop.eup %729  ;;  %v389_v13 = vadd.f32 %v369_v5, %v368_v62  ;;  %v340_v14 = vadd.f32 1.0, %v728_v9  ;;  %741 = vtanh.f32 %v311_v6  ;;  %v268_v28 = vmul.f32 %v252_v8, %v938_v46 }
 0x106   :  { %v732_v15 = vpop.eup %731  ;;  %v382_v17 = vadd.f32 %v367_v10, %v366_v2  ;;  %v338_v18 = vadd.f32 1.0, %v730_v25  ;;  %v250_v19 = vmul.f32 %v950_v23, %v950_v23  ;;  %v253_v31 = vmul.f32 %v953_v12, %v953_v12 }
 0x107   :  { %v734_v20 = vpop.eup %733  ;;  %v390_v24 = vrot.slane %v389_v13, 4  ;;  %v356_v26 = vmul.f32 0.5, %v340_v14  ;;  %v341_v27 = vadd.f32 1.0, %v732_v15  ;;  %v284_v29 = vmul.f32 0.044715, %v268_v28 }
 0x108   :  { %v383_v30 = vrot.slane %v382_v17, 4  ;;  %v354_v32 = vmul.f32 0.5, %v338_v18  ;;  %v339_v33 = vadd.f32 1.0, %v734_v20  ;;  %v266_v34 = vmul.f32 %v250_v19, %v950_v23 }
 0x109   :  { %v391_v35 = vadd.f32 %v390_v24, %v389_v13  ;;  %v357_v36 = vmul.f32 0.5, %v341_v27  ;;  %v300_v37 = vadd.f32 %v284_v29, %v938_v46  ;;  %v372_v39 = vmul.f32 %v356_v26, %v882_v43 }
 0x10a   :  { %v384_v38 = vadd.f32 %v383_v30, %v382_v17  ;;  %v355_v40 = vmul.f32 0.5, %v339_v33  ;;  %v282_v41 = vmul.f32 0.044715, %v266_v34  ;;  %v370_v44 = vmul.f32 %v354_v32, %v886_v47 }
 0x10b   :  { %v392_v42 = vrot.slane %v391_v35, 2  ;;  %v373_v45 = vmul.f32 %v357_v36, %v892_v52  ;;  %v316_v48 = vmul.f32 0.7978846, %v300_v37  ;;  %v269_v54 = vmul.f32 %v253_v31, %v953_v12 }
 0x10c   :  { %v736_v49 = vpop.eup %735  ;;  %v385_v50 = vrot.slane %v384_v38, 2  ;;  %v371_v51 = vmul.f32 %v355_v40, %v898_v57  ;;  %v298_v53 = vadd.f32 %v282_v41, %v950_v23  ;;  %v969_v59 = vadd.f32 %v854_v21, %v226_v61 }
 0x10d   :  { %v738_v55 = vpop.eup %737  ;;  %v393_v56 = vadd.f32 %v392_v42, %v391_v35  ;;  %v403_v58 = vadd.f32 %v373_v45, %v372_v39  ;;  %v344_v43 = vadd.f32 1.0, %v736_v49  ;;  %743 = vtanh.f32 %v316_v48 }
 0x10e   :  { %v740_v60 = vpop.eup %739  ;;  %v386_v47 = vadd.f32 %v385_v50, %v384_v38  ;;  %v396_v62 = vadd.f32 %v371_v51, %v370_v44  ;;  %v342_v52 = vadd.f32 1.0, %v738_v55  ;;  %v314_v21 = vmul.f32 0.7978846, %v298_v53 }
 0x10f   :  { %v742_v63 = vpop.eup %741  ;;  %v394_v0 = vrot.slane %v393_v56, 1  ;;  %v404_v1 = vrot.slane %v403_v58, 4  ;;  %v360_v57 = vmul.f32 0.5, %v344_v43  ;;  %v345_v2 = vadd.f32 1.0, %v740_v60 }
 0x110   :  { %v387_v3 = vrot.slane %v386_v47, 1  ;;  %v397_v4 = vrot.slane %v396_v62, 4  ;;  %v358_v5 = vmul.f32 0.5, %v342_v52  ;;  %v343_v6 = vadd.f32 1.0, %v742_v63 }
 0x111   :  { %v395_v8 = vadd.f32 %v394_v0, %v393_v56  ;;  %v405_v9 = vadd.f32 %v404_v1, %v403_v58  ;;  %v361_v10 = vmul.f32 0.5, %v345_v2  ;;  %v376_v13 = vmul.f32 %v360_v57, %v910_v7 }
 0x112   :  { %v388_v61 = vadd.f32 %v387_v3, %v386_v47  ;;  %v398_v25 = vadd.f32 %v397_v4, %v396_v62  ;;  %v359_v14 = vmul.f32 0.5, %v343_v6  ;;  %v374_v17 = vmul.f32 %v358_v5, %v914_v11 }
 0x113   :  { %v439_v28 = vmul.f32 0.0625, %v395_v8  ;;  %v406_v15 = vrot.slane %v405_v9, 2  ;;  %v377_v18 = vmul.f32 %v361_v10, %v920_v16  ;;  %v285_v24 = vmul.f32 0.044715, %v269_v54 }
 0x114   :  { %v438_v19 = vmul.f32 0.0625, %v388_v61  ;;  %v399_v31 = vrot.slane %v398_v25, 2  ;;  %v375_v20 = vmul.f32 %v359_v14, %v926_v22  ;;  %v251_v30 = vmul.f32 %v969_v59, %v969_v59 }
 0x115   :  { %v447_v26 = vpack.c.bf16 %v439_v28, %v439_v28  ;;  %v407_v27 = vadd.f32 %v406_v15, %v405_v9  ;;  %v417_v29 = vadd.f32 %v377_v18, %v376_v13  ;;  %v301_v34 = vadd.f32 %v285_v24, %v953_v12 }
 0x116   :  { %v446_v32 = vpack.c.bf16 %v438_v19, %v438_v19  ;;  %v400_v7 = vadd.f32 %v399_v31, %v398_v25  ;;  %v410_v33 = vadd.f32 %v375_v20, %v374_v17  ;;  %v267_v16 = vmul.f32 %v251_v30, %v969_v59 }
 0x117   :  { %v486_v35 = vunpack.c.l.b16 %v447_v26  ;;  %v408_v11 = vrot.slane %v407_v27, 1  ;;  %v418_v36 = vrot.slane %v417_v29, 4  ;;  %v744_v37 = vpop.eup %743  ;;  %745 = vtanh.f32 %v314_v21 }
 0x118   :  { %v485_v38 = vunpack.c.l.b16 %v446_v32  ;;  %v401_v22 = vrot.slane %v400_v7, 1  ;;  %v411_v39 = vrot.slane %v410_v33, 4  ;;  %v317_v42 = vmul.f32 0.7978846, %v301_v34 }
 0x119   :  { %v409_v40 = vadd.f32 %v408_v11, %v407_v27  ;;  %v419_v41 = vadd.f32 %v418_v36, %v417_v29  ;;  %v283_v44 = vmul.f32 0.044715, %v267_v16  ;;  %v348_v0 = vadd.f32 1.0, %v744_v37 }
 0x11a   :  { %v402_v45 = vadd.f32 %v401_v22, %v400_v7  ;;  %v412_v48 = vadd.f32 %v411_v39, %v410_v33  ;;  %v494_v49 = vsel %vm493_vm2, %v486_v35, %v485_v38  ;;  %747 = vtanh.f32 %v317_v42 }
 0x11b   :  { %v441_v50 = vmul.f32 0.0625, %v409_v40  ;;  %v420_v51 = vrot.slane %v419_v41, 2  ;;  %v299_v53 = vadd.f32 %v283_v44, %v969_v59  ;;  %v364_v10 = vmul.f32 0.5, %v348_v0 }
 0x11c   :  { %v440_v54 = vmul.f32 0.0625, %v402_v45  ;;  %v413_v55 = vrot.slane %v412_v48, 2 }
 0x11d   :  { %v449_v56 = vpack.c.bf16 %v441_v50, %v441_v50  ;;  %v421_v58 = vadd.f32 %v420_v51, %v419_v41  ;;  %v315_v43 = vmul.f32 0.7978846, %v299_v53  ;;  %v380_v17 = vmul.f32 %v364_v10, %v938_v46  ;;  %v623_v50 = vld [vmem:[%s995_s4] ss:$0 sm:$0xff] }
 0x11e   :  { %v448_v60 = vpack.c.bf16 %v440_v54, %v440_v54  ;;  %v414_v47 = vadd.f32 %v413_v55, %v412_v48 }
 0x11f   :  { %v422_v62 = vrot.slane %v421_v58, 1  ;;  %749 = vtanh.f32 %v315_v43  ;;  %v488_v57 = vunpack.c.l.b16 %v449_v56 }
 0x120   :  { %v487_v52 = vunpack.c.l.b16 %v448_v60  ;;  %v415_v63 = vrot.slane %v414_v47, 1 }
 0x121   :  { %v423_v1 = vadd.f32 %v422_v62, %v421_v58  ;;  %v746_v2 = vpop.eup %745 }
 0x122   :  { %v416_v3 = vadd.f32 %v415_v63, %v414_v47  ;;  %v496_v4 = vsel %vm495_vm3, %v487_v52, %v494_v49  ;;  %v346_v61 = vadd.f32 1.0, %v746_v2 }
 0x123   :  { %v443_v5 = vmul.f32 0.0625, %v423_v1  ;;  %v498_v6 = vsel %vm497_vm4, %v488_v57, %v496_v4 }
 0x124   :  { %v442_v8 = vmul.f32 0.0625, %v416_v3  ;;  %v748_v9 = vpop.eup %747  ;;  %v362_v19 = vmul.f32 0.5, %v346_v61 }
 0x125   :  { %v451_v21 = vpack.c.bf16 %v443_v5, %v443_v5  ;;  %v349_v25 = vadd.f32 1.0, %v748_v9 }
 0x126   :  { %v450_v13 = vpack.c.bf16 %v442_v8, %v442_v8  ;;  %v378_v30 = vmul.f32 %v362_v19, %v950_v23 }
 0x127   :  { %v365_v14 = vmul.f32 0.5, %v349_v25  ;;  %v490_v18 = vunpack.c.l.b16 %v451_v21 }
 0x128   :  { %v489_v28 = vunpack.c.l.b16 %v450_v13 }
 0x129   :  { %v750_v15 = vpop.eup %749  ;;  %v381_v31 = vmul.f32 %v365_v14, %v953_v12 }
 0x12a   :  { %v347_v20 = vadd.f32 1.0, %v750_v15  ;;  %v500_v24 = vsel %vm499_vm5, %v489_v28, %v498_v6 }
 0x12b   :  { %v502_v26 = vsel %vm501_vm6, %v490_v18, %v500_v24  ;;  %v431_v27 = vadd.f32 %v381_v31, %v380_v17 }
 0x12c   :  { %v363_v29 = vmul.f32 0.5, %v347_v20 }
 0x12d   :  { %v432_v32 = vrot.slane %v431_v27, 4 }
 0x12e   :  { %v379_v7 = vmul.f32 %v363_v29, %v969_v59 }
 0x12f   :  { %v433_v33 = vadd.f32 %v432_v32, %v431_v27 }
 0x130   :  { %v424_v34 = vadd.f32 %v379_v7, %v378_v30 }
 0x131   :  { %v434_v11 = vrot.slane %v433_v33, 2 }
 0x132   :  { %v425_v35 = vrot.slane %v424_v34, 4 }
 0x133   :  { %v435_v46 = vadd.f32 %v434_v11, %v433_v33 }
 0x134   :  { %v426_v36 = vadd.f32 %v425_v35, %v424_v34 }
 0x135   :  { %v436_v37 = vrot.slane %v435_v46, 1 }
 0x136   :  { %v427_v16 = vrot.slane %v426_v36, 2 }
 0x137   :  { %v437_v12 = vadd.f32 %v436_v37, %v435_v46 }
 0x138   :  { %v428_v38 = vadd.f32 %v427_v16, %v426_v36 }
 0x139   :  { %v445_v39 = vmul.f32 0.0625, %v437_v12 }
 0x13a   :  { %v429_v22 = vrot.slane %v428_v38, 1 }
 0x13b   :  { %v453_v42 = vpack.c.bf16 %v445_v39, %v445_v39 }
 0x13c   :  { %v430_v40 = vadd.f32 %v429_v22, %v428_v38 }
 0x13d   :  { %v492_v59 = vunpack.c.l.b16 %v453_v42 }
 0x13e   :  { %v444_v41 = vmul.f32 0.0625, %v430_v40 }
 0x140   :  { %v452_v44 = vpack.c.bf16 %v444_v41, %v444_v41 }
 0x142   :  { %v491_v23 = vunpack.c.l.b16 %v452_v44 }
 0x144   :  { %v504_v45 = vsel %vm503_vm7, %v491_v23, %v502_v26 }
 0x145   :  { %v506_v48 = vsel %vm505_vm8, %v492_v59, %v504_v45 }
 0x146   :  { %v507_v49 = vpack.c.b16 %v506_v48, %v506_v48 }
 0x148   :  { %694 = vmatmul.mubr.bf16.vlgmr.msra.gmra.mrb[0].mxu1 %v507_v49 }
 0x21b   :  { %v591_v51 = vpop.f32.mrb[0].mxu1 }
 0x21c   :  { %v592_v53 = vadd.f32 %v623_v50, %v591_v51  ;;  %v695_v54 = vpop.f32.mrb[1].mxu1 }
 0x21d   :  { %v594_v55 = vpop.f32.mrb[2].mxu1 }
 0x21e   :  { %597 = vst [vmem:[%s996_s5] sm:$0xff] %v592_v53  ;;  %v696_v56 = vpop.f32.mrb[3].mxu1 }

</bundles_post_ra>
